<compile_context>
chip_gen: v7x
topology: tpu7x:2x2x1
jax: 0.10.0
libtpu: 0.0.40
codegen_flags: <defaults>
</compile_context>

<pallas_src>
import math

import jax
import jax.numpy as jnp
from jax.experimental import pallas as pl
from jax.experimental.pallas import tpu as pltpu


def _copy_kernel(in_ref, out_ref):
    # Pure lane-dense tile copy; identical block shapes on both sides.
    out_ref[...] = in_ref[...]


def _slab_shape(total, B, D, sub):
    """Pick a lane-dense 2-D view (R, W) of the flat element stream.

    Prefers the widest W (multiple of 128, <= 8192) dividing `total` whose row
    count R is a positive multiple of the packed-sublane count `sub` (full
    vregs). Falls back to the widest lane-dense W at all, then to (B, D)
    (the cdiv grid + edge masking handles any shape correctly).
    """
    fallback = None
    W = 8192
    while W >= 128:
        if total % W == 0:
            R = total // W
            if R >= sub and R % sub == 0:
                return R, W
            if fallback is None:
                fallback = (R, W)
        W -= 128
    return fallback if fallback is not None else (B, D)


def _dense_copy(x, *, donate=False):
    """HBM->HBM copy of a 2-D array via a lane-dense tiled Pallas kernel."""
    B, D = x.shape
    total = B * D
    itemsize = jnp.dtype(x.dtype).itemsize
    # Packed-sublane alignment: 8 rows for f32, 16 for bf16, 32 for int8/fp8.
    sub = max(8, 32 // max(1, itemsize))

    R, W = _slab_shape(total, B, D, sub)
    slab = x.reshape(R, W)  # metadata-only

    # Fixed lane-dense tiles; cdiv grid masks partial edge blocks.
    # 256 x 2048 f32 = 2 MiB per buffer -> in+out double-buffered ~8 MiB,
    # safe under v5e's 16 MiB default scoped VMEM; on the roofline plateau.
    tb = R if R <= 256 else 256
    td = W if W <= 2048 else 2048
    grid = (pl.cdiv(R, tb), pl.cdiv(W, td))

    out = pl.pallas_call(
        _copy_kernel,
        out_shape=jax.ShapeDtypeStruct((R, W), x.dtype),
        grid=grid,
        in_specs=[pl.BlockSpec((tb, td), lambda i, j: (i, j))],
        out_specs=pl.BlockSpec((tb, td), lambda i, j: (i, j)),
        compiler_params=pltpu.CompilerParams(
            dimension_semantics=("parallel", "parallel"),
        ),
        cost_estimate=pl.CostEstimate(
            flops=0, transcendentals=0, bytes_accessed=2 * total * itemsize
        ),
        input_output_aliases=({0: 0} if donate else {}),
    )(slab)
    return out.reshape(B, D)


def unflatten(x, n_channels, *, use_copy_kernel=True, donate=False):
    """x: (B, D) with D = n_channels * size * size -> (B, n_channels, size, size)."""
    B, D = x.shape
    chw = D // n_channels
    size = math.isqrt(chw)
    assert size * size == chw and n_channels * size * size == D, (
        "D must equal n_channels * size^2"
    )

    if not use_copy_kernel:
        # Recommended path: a row-major view is metadata-only in XLA.
        return x.reshape(B, n_channels, size, size)

    flat = _dense_copy(x, donate=donate)
    # Metadata-only reshape to NCHW outside the kernel (lane-dense kernel output).
    return flat.reshape(B, n_channels, size, size)


if __name__ == "__main__":
    key = jax.random.PRNGKey(0)

    # Primary case: B=2, C=4, spatial=16 -> flat input (2, 1024).
    B, n_channels, size = 2, 4, 16
    D = n_channels * size * size  # 1024
    x = jax.random.normal(key, (B, D), dtype=jnp.float32)

    out = unflatten(x, n_channels)
    out = jax.block_until_ready(out)

    ref = x.reshape(B, n_channels, size, size)
    assert out.shape == (B, n_channels, size, size)
    assert out.dtype == x.dtype
    assert bool(jnp.array_equal(out, ref))

    # Secondary case exercising the non-128-divisible fallback path.
    B2, c2, s2 = 4, 3, 10
    D2 = c2 * s2 * s2  # 300 (not a multiple of 128)
    x2 = jax.random.normal(jax.random.PRNGKey(1), (B2, D2), dtype=jnp.float32)
    out2 = jax.block_until_ready(unflatten(x2, c2))
    assert bool(jnp.array_equal(out2, x2.reshape(B2, c2, s2, s2)))

    print("KERNEL_OK")
</pallas_src>

<mosaic_0001>
module attributes {stable_mosaic.version = 11 : i64} {
  func.func @_copy_kernel(%arg0: i32, %arg1: i32, %arg2: memref<8x256xf32, #tpu.memory_space<vmem>>, %arg3: memref<8x256xf32, #tpu.memory_space<vmem>>) attributes {dimension_semantics = [#tpu.dimension_semantics<parallel>, #tpu.dimension_semantics<parallel>], iteration_bounds = array<i64: 1, 1>, scalar_prefetch = 0 : i64, scratch_operands = 0 : i64, tpu.core_type = #tpu.core_type<tc>, window_params = [{transform_indices = @transform_0, window_bounds = array<i64: 8, 256>}, {transform_indices = @transform_1, window_bounds = array<i64: 8, 256>}]} {
    %c0 = arith.constant 0 : index
    %c0_0 = arith.constant 0 : index
    %0 = vector.load %arg2[%c0, %c0_0] : memref<8x256xf32, #tpu.memory_space<vmem>>, vector<8x256xf32>
    %c0_1 = arith.constant 0 : index
    %c0_2 = arith.constant 0 : index
    %1 = vector.load %arg3[%c0_1, %c0_2] : memref<8x256xf32, #tpu.memory_space<vmem>>, vector<8x256xf32>
    tpu.vector_store %arg3[%c0_1, %c0_2], %0 {strides = array<i32>} : memref<8x256xf32, #tpu.memory_space<vmem>>, vector<8x256xf32>,
    return
  }
  func.func @transform_0(%arg0: i32, %arg1: i32) -> (i32, i32) {
    %c0_i32 = arith.constant 0 : i32
    return %arg0, %arg1 : i32, i32
  }
  func.func @transform_1(%arg0: i32, %arg1: i32) -> (i32, i32) {
    %c0_i32 = arith.constant 0 : i32
    return %arg0, %arg1 : i32, i32
  }
}

</mosaic_0001>

<bundles_post_ra>
// kernel: tpu_custom_call.1
= control target key start
LH: loop header
LB: loop body
LE: loop exit
PB: predicated region body
PF: predicated region fallthrough
CT: control target
= control target key end

     0   :  { %6 = vsyncpa [#allocation3], 0  ;;  %s126_s0 = inlined_call_operand.hbm [shape: f32[8,256], index: 0, kind: input, shape index: {}]   ;;  %s127_s1 = inlined_call_operand.hbm [shape: f32[8,256], index: 1, kind: output, shape index: {}]  }
   0x1   :  { %7 = vsyncpa [#allocation4], 0  ;;  %s90_s6 = smov [#allocation2]   ;;  %s42_s10 = scalar_lea.hbm %s126_s0, 256 }
   0x2   :  { %s14_s7 = sshll.u32 %s90_s6, 4  ;;  %p43_p0 = scmp.ne.s32.totalorder %s126_s0, %s42_s10  ;;  %s15_s7 = int_to_ptr.vmem [resolvable:$true] %s14_s7 }
   0x3   :  { %p46_p1 = scmp.lt.u32.totalorder %s42_s10, %s126_s0 }
   0x5   :  { %p48_p2 = pnand %p46_p1, %p43_p0 }
   0x7   :  { %51 = shalt.err (!%p48_p2)
}
   0x8   :  { %s52_s15 = scalar_lea.vmem %s15_s7, 256  ;;  %p57_p4 = scmp.lt.s32.totalorder %s15_s7, %s15_s7 }
   0x9   :  { %p53_p3 = scmp.ne.s32.totalorder %s15_s7, %s52_s15  ;;  %p58_p5 = scmp.lt.s32.totalorder %s52_s15, %s52_s15 }
   0xb   :  { %p59_p6 = por %p58_p5, %p57_p4 }
   0xd   :  { %p60_p7 = pnand %p59_p6, %p53_p3 }
   0xf   :  { %63 = shalt.err (!%p60_p7)
}
  0x10   :  { %17 = dma.hbm_to_vmem [thread:$0]  %s126_s0, 256, %s15_s7, [#allocation3]  }
  0x11   :  { %86 = dma.done.wait [#allocation3], 256  }
  0x12   :  { %87 = vsyncadd [#allocation3], 4294967040  ;;  %s91_s18 = smov [#allocation5]   ;;  %v21_v0 = vld [vmem:[#allocation2] sm:$0xff]  ;;  %v22_v1 = vld [vmem:[#allocation2 + $0x8] sm:$0xff] }
  0x13   :  { %s31_s19 = sshll.u32 %s91_s18, 4  ;;  %23 = vst [vmem:[#allocation5] sm:$0xff] %v21_v0  ;;  %24 = vst [vmem:[#allocation5 + $0x8] sm:$0xff] %v22_v1  ;;  %s32_s19 = int_to_ptr.vmem [resolvable:$true] %s31_s19 }
  0x14   :  { %s64_s20 = scalar_lea.vmem %s32_s19, 256  ;;  %p69_p9 = scmp.lt.s32.totalorder %s32_s19, %s32_s19 }
  0x15   :  { %p65_p8 = scmp.ne.s32.totalorder %s32_s19, %s64_s20  ;;  %p70_p10 = scmp.lt.s32.totalorder %s64_s20, %s64_s20 }
  0x17   :  { %p71_p11 = por %p70_p10, %p69_p9 }
  0x19   :  { %p72_p12 = pnand %p71_p11, %p65_p8 }
  0x1b   :  { %75 = shalt.err (!%p72_p12)
}
  0x1c   :  { %s76_s0 = scalar_lea.hbm %s127_s1, 256 }
  0x1d   :  { %p77_p13 = scmp.ne.s32.totalorder %s127_s1, %s76_s0  ;;  %p80_p0 = scmp.lt.u32.totalorder %s76_s0, %s127_s1 }
  0x1f   :  { %p82_p1 = pnand %p80_p0, %p77_p13 }
  0x21   :  { %85 = shalt.err (!%p82_p1)
}
  0x22   :  { %34 = dma.vmem_to_hbm [thread:$0]  %s32_s19, 256, %s127_s1, [#allocation4]  }
  0x23   :  { %88 = dma.done.wait [#allocation4], 256  }
  0x24   :  { %89 = vsyncadd [#allocation4], 4294967040 }
  0x25   :  { %38 = vsyncpa [#allocation3], 1 }
  0x26   :  { %39 = vsyncpa [#allocation4], 1 }

</bundles_post_ra>
